<compile_context>
chip_gen: v7x
topology: tpu7x:2x2x1
jax: 0.10.0
libtpu: 0.0.40
codegen_flags: <defaults>
</compile_context>

<pallas_src>
from functools import partial

import jax
import jax.numpy as jnp
from jax import lax
from jax.experimental import pallas as pl
from jax.experimental.pallas import tpu as pltpu


# --------------------------------------------------------------------------
# Kernels
# --------------------------------------------------------------------------
def _l2_normalize(y, eps):
    # F.normalize(y, p=2, dim=1) == y / max(||y||, eps) == y * rsqrt(max(||y||^2, eps^2))
    ss = jnp.sum(y * y, axis=-1, keepdims=True)
    return y * lax.rsqrt(jnp.maximum(ss, eps * eps))


def _neck_pool_kernel(x_ref, w_ref, b_ref, o_ref, *, inv_hw, with_norm,
                      eps_norm, mxu_dtype):
    # AdaptiveAvgPool2d((1,1)) == mean over flattened spatial axis (f32 accum).
    feat = jnp.sum(x_ref[...].astype(jnp.float32), axis=-1) * inv_hw      # (TN, C)
    y = jnp.dot(feat.astype(mxu_dtype), w_ref[...],
                preferred_element_type=jnp.float32) + b_ref[...]          # (TN, Mp)
    if with_norm:
        y = _l2_normalize(y, eps_norm)
    o_ref[...] = y.astype(o_ref.dtype)


def _neck_flat_kernel(x_ref, w_ref, b_ref, o_ref, *, with_norm, eps_norm,
                      mxu_dtype):
    y = jnp.dot(x_ref[...].astype(mxu_dtype), w_ref[...],
                preferred_element_type=jnp.float32) + b_ref[...]
    if with_norm:
        y = _l2_normalize(y, eps_norm)
    o_ref[...] = y.astype(o_ref.dtype)


def _neck_flat_ktiled_kernel(x_ref, w_ref, b_ref, o_ref, acc_ref, *, with_norm,
                             eps_norm, mxu_dtype, k_total, need_mask):
    k = pl.program_id(1)

    @pl.when(k == 0)
    def _init():
        acc_ref[...] = jnp.zeros_like(acc_ref)

    feat = x_ref[...].astype(mxu_dtype)
    if need_mask:
        # The last reduction block may read past K (undefined values): zero it.
        tk = x_ref.shape[-1]
        col = lax.broadcasted_iota(jnp.int32, feat.shape, 1) + k * tk
        feat = jnp.where(col < k_total, feat, jnp.zeros_like(feat))
    acc_ref[...] += jnp.dot(feat, w_ref[...], preferred_element_type=jnp.float32)

    @pl.when(k == pl.num_programs(1) - 1)
    def _finalize():
        y = acc_ref[...] + b_ref[...]
        if with_norm:
            y = _l2_normalize(y, eps_norm)
        o_ref[...] = y.astype(o_ref.dtype)


# --------------------------------------------------------------------------
# Wrapper
# --------------------------------------------------------------------------
def _maybe_single_buffered(shape, index_map, nbytes):
    """Grid-invariant block -> single VMEM buffer when it is big enough to
    matter; silently falls back to the default double-buffered spec."""
    if nbytes >= (4 << 20):
        try:
            return pl.BlockSpec(shape, index_map, pipeline_mode=pl.Buffered(1))
        except Exception:
            pass
    return pl.BlockSpec(shape, index_map)


def linear_neck_forward(inputs, params, *, with_avg_pool=True, with_norm=False,
                        eps_norm=1e-12, mxu_dtype=jnp.bfloat16, k_tile=None):
    """Mirrors LinearNeck.forward: list/tuple of 1-2 feature maps -> [out]."""
    assert len(inputs) in (1, 2)
    x = inputs[0]
    N = x.shape[0]
    w = params["fc_w"]                       # (out_channels, in_features)
    b = params["fc_b"]                       # (out_channels,)
    M, K = w.shape

    mxu_dtype = jnp.dtype(mxu_dtype)
    x_itemsize = jnp.dtype(x.dtype).itemsize
    Mp = 128 * pl.cdiv(M, 128)               # lane-dense (unmasked vst) output
    out_row_bytes = Mp * 4

    # ---- per-generation VMEM / tile budget --------------------------------
    try:
        vmem_cap = int(pltpu.get_tpu_info().vmem_capacity_bytes)
    except Exception:
        vmem_cap = 64 << 20                  # v7x per-TC size: safe fallback
    budget = max(16 << 20, min(vmem_cap, 128 << 20) - (16 << 20))
    vmem_limit = max(16 << 20, min(vmem_cap, 128 << 20) - (4 << 20))

    try:
        kind = jax.devices()[0].device_kind.lower()
    except Exception:
        kind = ""
    is_v5e = ("v5e" in kind) or ("v5 lite" in kind) or ("v5lite" in kind)
    tn_cap = 128 if is_v5e else 512          # v5e: 128x128 MXU / 1 vst slot

    # ---- activation layout (native dtype, no wrapper pad/cast) ------------
    use_k_tiling = False
    if with_avg_pool:
        _, C, H, W = x.shape
        assert C == K, "fc in_features must equal channel count when with_avg_pool"
        HW = H * W
        x_k = x.reshape(N, C, HW)            # trailing-dim collapse: free
        x_row_bytes = C * HW * x_itemsize
        row_tmp_bytes = (C * HW * 4 if x_itemsize < 4 else 0) + C * (4 + mxu_dtype.itemsize)
        w_bytes = K * Mp * mxu_dtype.itemsize
    else:
        x_k = x.reshape(N, -1)
        assert x_k.shape[1] == K
        w_block_bytes = K * Mp * mxu_dtype.itemsize
        TK = int(k_tile) if k_tile is not None else 512
        use_k_tiling = K > TK and (k_tile is not None or w_block_bytes > budget // 4)
        if use_k_tiling:
            nk = pl.cdiv(K, TK)
            x_row_bytes = TK * x_itemsize
            row_tmp_bytes = TK * mxu_dtype.itemsize + out_row_bytes  # cast tmp + acc row
            w_bytes = TK * Mp * mxu_dtype.itemsize
        else:
            x_row_bytes = K * x_itemsize
            row_tmp_bytes = K * mxu_dtype.itemsize
            w_bytes = w_block_bytes

    # ---- batch tile: biggest TN that still double-buffers inside budget ----
    per_tn = 2 * x_row_bytes + row_tmp_bytes + 2 * out_row_bytes
    fixed = 2 * w_bytes + Mp * 4 + (2 << 20)          # weight budgeted at 2 bufs
    tn = max(8, (budget - fixed) // max(per_tn, 1))
    tn = min(tn, tn_cap)
    if N > 8:
        # Keep >= 2 batch tiles so the "parallel" axis can split across v7x's
        # two TensorCores (harmless on single-core v5e/v6e).
        tn = min(tn, 8 * pl.cdiv(pl.cdiv(N, 2), 8))
    if N <= 8:
        TN = N                                        # one full, in-bounds block
    else:
        TN = min(max(8, (int(tn) // 8) * 8), 8 * pl.cdiv(N, 8))
    grid_n = pl.cdiv(N, TN)

    # ---- parameters: transpose once, pad out_channels to a lane multiple ---
    w_t = w.T.astype(mxu_dtype)                        # (K, M) MXU-native RHS
    b_p = jnp.pad(b.astype(jnp.float32), (0, Mp - M)).reshape(1, Mp)

    # ---- cost estimate (lets XLA schedule around the custom call) ----------
    flops = 2.0 * N * K * M
    if with_avg_pool:
        flops += float(N) * K * HW
    if with_norm:
        flops += 3.0 * N * M
    bytes_accessed = (x_k.size * x_itemsize + K * Mp * mxu_dtype.itemsize
                      + Mp * 4 + N * Mp * 4)
    cost = pl.CostEstimate(flops=int(flops),
                           transcendentals=int(N) if with_norm else 0,
                           bytes_accessed=int(bytes_accessed))

    out_shape = jax.ShapeDtypeStruct((N, Mp), jnp.float32)

    if with_avg_pool:
        w_p = jnp.pad(w_t, ((0, 0), (0, Mp - M)))
        kernel = partial(_neck_pool_kernel, inv_hw=1.0 / HW, with_norm=with_norm,
                         eps_norm=eps_norm, mxu_dtype=mxu_dtype)
        out_p = pl.pallas_call(
            kernel,
            out_shape=out_shape,
            grid=(grid_n,),
            in_specs=[
                pl.BlockSpec((TN, C, HW), lambda i: (i, 0, 0)),
                _maybe_single_buffered((K, Mp), lambda i: (0, 0),
                                       K * Mp * mxu_dtype.itemsize),
                pl.BlockSpec((1, Mp), lambda i: (0, 0)),
            ],
            out_specs=pl.BlockSpec((TN, Mp), lambda i: (i, 0)),
            compiler_params=pltpu.CompilerParams(
                dimension_semantics=("parallel",),
                vmem_limit_bytes=vmem_limit),
            cost_estimate=cost,
        )(x_k, w_p, b_p)
    elif not use_k_tiling:
        w_p = jnp.pad(w_t, ((0, 0), (0, Mp - M)))
        kernel = partial(_neck_flat_kernel, with_norm=with_norm,
                         eps_norm=eps_norm, mxu_dtype=mxu_dtype)
        out_p = pl.pallas_call(
            kernel,
            out_shape=out_shape,
            grid=(grid_n,),
            in_specs=[
                pl.BlockSpec((TN, K), lambda i: (i, 0)),
                _maybe_single_buffered((K, Mp), lambda i: (0, 0),
                                       K * Mp * mxu_dtype.itemsize),
                pl.BlockSpec((1, Mp), lambda i: (0, 0)),
            ],
            out_specs=pl.BlockSpec((TN, Mp), lambda i: (i, 0)),
            compiler_params=pltpu.CompilerParams(
                dimension_semantics=("parallel",),
                vmem_limit_bytes=vmem_limit),
            cost_estimate=cost,
        )(x_k, w_p, b_p)
    else:
        # K-tiled reduction: weight K-padded with zeros; activation tail masked
        # in-kernel, so no activation copy/pad is ever materialized in HBM.
        Kp = TK * nk
        w_p = jnp.pad(w_t, ((0, Kp - K), (0, Mp - M)))
        kernel = partial(_neck_flat_ktiled_kernel, with_norm=with_norm,
                         eps_norm=eps_norm, mxu_dtype=mxu_dtype,
                         k_total=K, need_mask=(K % TK != 0))
        out_p = pl.pallas_call(
            kernel,
            out_shape=out_shape,
            grid=(grid_n, nk),
            in_specs=[
                pl.BlockSpec((TN, TK), lambda i, k: (i, k)),
                pl.BlockSpec((TK, Mp), lambda i, k: (k, 0)),
                pl.BlockSpec((1, Mp), lambda i, k: (0, 0)),
            ],
            out_specs=pl.BlockSpec((TN, Mp), lambda i, k: (i, 0)),
            scratch_shapes=[pltpu.VMEM((TN, Mp), jnp.float32)],
            compiler_params=pltpu.CompilerParams(
                dimension_semantics=("parallel", "arbitrary"),
                vmem_limit_bytes=vmem_limit),
            cost_estimate=cost,
        )(x_k, w_p, b_p)

    return [out_p[:, :M]]


# --------------------------------------------------------------------------
# Parameters / reference
# --------------------------------------------------------------------------
def init_linear_neck_params(key, in_features, out_channels):
    """Synthetic fc parameters (shapes match nn.Linear(in_features, out_channels))."""
    k1, k2 = jax.random.split(key)
    return {
        "fc_w": 1.5 * jax.random.normal(k1, (out_channels, in_features), jnp.float32),
        "fc_b": 0.1 * jax.random.normal(k2, (out_channels,), jnp.float32),
    }


def _reference_forward(inputs, params, with_avg_pool=True, with_norm=False,
                       eps_norm=1e-12):
    """Pure-JAX reference mirroring the PyTorch forward."""
    x = inputs[0]
    if with_avg_pool:
        x = jnp.mean(x, axis=(2, 3))
    x = x.reshape(x.shape[0], -1)
    y = x @ params["fc_w"].T + params["fc_b"]
    if with_norm:
        y = y / jnp.maximum(jnp.linalg.norm(y, axis=1, keepdims=True), eps_norm)
    return y


if __name__ == "__main__":
    # Module config: LinearNeck(in_channels=4, out_channels=32, with_avg_pool=True)
    N, C, HW, OUT = 2, 4, 16, 32

    key = jax.random.PRNGKey(0)
    kx, kp, kf = jax.random.split(key, 3)
    x = jax.random.normal(kx, (N, C, HW, HW), dtype=jnp.float32)
    params = init_linear_neck_params(kp, C, OUT)

    def rel_err(a, b):
        return float(jnp.linalg.norm(a - b) / (jnp.linalg.norm(b) + 1e-12))

    # 1) with_avg_pool=True (the module's default), with / without L2 norm.
    for with_norm in (False, True):
        out = linear_neck_forward([x], params, with_avg_pool=True,
                                  with_norm=with_norm)
        out0 = jax.block_until_ready(out[0])
        ref = _reference_forward([x], params, with_avg_pool=True,
                                 with_norm=with_norm)
        assert out0.shape == (N, OUT)
        # bf16 MXU operands (f32 accumulation) vs f32 reference.
        assert rel_err(out0, ref) < 1e-2, f"pool path mismatch (with_norm={with_norm})"

    # 2) with_avg_pool=False (flattened features): plain path and forced
    #    K-tiled reduction path (K=1000 not a multiple of the 256 K-tile, so
    #    the in-kernel tail mask is exercised too).
    K_FLAT = 1000
    x_flat = jax.random.normal(kf, (N, K_FLAT), dtype=jnp.float32)
    params_flat = init_linear_neck_params(kp, K_FLAT, OUT)
    ref = _reference_forward([x_flat], params_flat, with_avg_pool=False,
                             with_norm=True)
    for k_tile in (None, 256):
        out = linear_neck_forward([x_flat], params_flat, with_avg_pool=False,
                                  with_norm=True, k_tile=k_tile)
        out0 = jax.block_until_ready(out[0])
        assert out0.shape == (N, OUT)
        assert rel_err(out0, ref) < 1e-2, f"flat path mismatch (k_tile={k_tile})"

    print("KERNEL_OK")
</pallas_src>

<mosaic_0001>
module attributes {stable_mosaic.version = 11 : i64} {
  func.func @_neck_pool_kernel(%arg0: i32, %arg1: memref<2x4x256xf32, #tpu.memory_space<vmem>>, %arg2: memref<4x128xbf16, #tpu.memory_space<vmem>>, %arg3: memref<1x128xf32, #tpu.memory_space<vmem>>, %arg4: memref<2x128xf32, #tpu.memory_space<vmem>>) attributes {dimension_semantics = [#tpu.dimension_semantics<parallel>], iteration_bounds = array<i64: 1>, scalar_prefetch = 0 : i64, scratch_operands = 0 : i64, tpu.core_type = #tpu.core_type<tc>, window_params = [{transform_indices = @transform_0, window_bounds = array<i64: 2, 4, 256>}, {pipeline_mode = #tpu.pipeline_mode<synchronous>, transform_indices = @transform_1, window_bounds = array<i64: 4, 128>}, {pipeline_mode = #tpu.pipeline_mode<synchronous>, transform_indices = @transform_2, window_bounds = array<i64: 1, 128>}, {transform_indices = @transform_3, window_bounds = array<i64: 2, 128>}]} {
    %c0 = arith.constant 0 : index
    %c0_0 = arith.constant 0 : index
    %c0_1 = arith.constant 0 : index
    %0 = vector.load %arg1[%c0, %c0_0, %c0_1] : memref<2x4x256xf32, #tpu.memory_space<vmem>>, vector<2x4x256xf32>
    %cst = arith.constant dense<0.000000e+00> : vector<2x4xf32>
    %1 = vector.multi_reduction <add>, %0, %cst [2] : vector<2x4x256xf32> to vector<2x4xf32>
    %cst_2 = arith.constant 3.906250e-03 : f32
    %2 = vector.broadcast %cst_2 : f32 to vector<2x4xf32>
    %3 = arith.mulf %1, %2 : vector<2x4xf32>
    %4 = arith.truncf %3 : vector<2x4xf32> to vector<2x4xbf16>
    %c0_3 = arith.constant 0 : index
    %c0_4 = arith.constant 0 : index
    %5 = vector.load %arg2[%c0_3, %c0_4] : memref<4x128xbf16, #tpu.memory_space<vmem>>, vector<4x128xbf16>
    %cst_5 = arith.constant dense<0.000000e+00> : vector<2x128xf32>
    %6 = tpu.matmul %4, %5, %cst_5 {dimension_numbers = #tpu.dot_dimension_numbers<[1], [0], [0], [1], [0, 0, 1, 1], [], []>} : vector<2x4xbf16>, vector<4x128xbf16>, vector<2x128xf32> -> vector<2x128xf32>
    %c0_6 = arith.constant 0 : index
    %c0_7 = arith.constant 0 : index
    %7 = vector.load %arg3[%c0_6, %c0_7] : memref<1x128xf32, #tpu.memory_space<vmem>>, vector<1x128xf32>
    %8 = vector.broadcast %7 : vector<1x128xf32> to vector<2x128xf32>
    %9 = arith.addf %6, %8 : vector<2x128xf32>
    %c0_8 = arith.constant 0 : index
    %c0_9 = arith.constant 0 : index
    %10 = vector.load %arg4[%c0_8, %c0_9] : memref<2x128xf32, #tpu.memory_space<vmem>>, vector<2x128xf32>
    tpu.vector_store %arg4[%c0_8, %c0_9], %9 {strides = array<i32>} : memref<2x128xf32, #tpu.memory_space<vmem>>, vector<2x128xf32>,
    return
  }
  func.func @transform_0(%arg0: i32) -> (i32, i32, i32) {
    %c0_i32 = arith.constant 0 : i32
    %c0_i32_0 = arith.constant 0 : i32
    %c0_i32_1 = arith.constant 0 : i32
    return %arg0, %c0_i32, %c0_i32_0 : i32, i32, i32
  }
  func.func @transform_1(%arg0: i32) -> (i32, i32) {
    %c0_i32 = arith.constant 0 : i32
    %c0_i32_0 = arith.constant 0 : i32
    %c0_i32_1 = arith.constant 0 : i32
    return %c0_i32, %c0_i32_0 : i32, i32
  }
  func.func @transform_2(%arg0: i32) -> (i32, i32) {
    %c0_i32 = arith.constant 0 : i32
    %c0_i32_0 = arith.constant 0 : i32
    %c0_i32_1 = arith.constant 0 : i32
    return %c0_i32, %c0_i32_0 : i32, i32
  }
  func.func @transform_3(%arg0: i32) -> (i32, i32) {
    %c0_i32 = arith.constant 0 : i32
    %c0_i32_0 = arith.constant 0 : i32
    return %arg0, %c0_i32 : i32, i32
  }
}

</mosaic_0001>

<bundles_post_ra>
// kernel: tpu_custom_call.1
= control target key start
LH: loop header
LB: loop body
LE: loop exit
PB: predicated region body
PF: predicated region fallthrough
CT: control target
= control target key end

     0   :  { %8 = vsyncpa [#allocation3], 0  ;;  %s264_s0 = inlined_call_operand.hbm [shape: f32[2,4,256], index: 0, kind: input, shape index: {}]   ;;  %s265_s1 = inlined_call_operand.vmem [shape: bf16[4,128], index: 1, kind: input, shape index: {}]   ;;  %s266_s2 = inlined_call_operand.vmem [shape: f32[1,128], index: 2, kind: input, shape index: {}]   ;;  %s267_s3 = inlined_call_operand.hbm [shape: f32[2,128], index: 3, kind: output, shape index: {}]  }
   0x1   :  { %9 = vsyncpa [#allocation4], 0  ;;  %s208_s12 = smov [#allocation2]   ;;  %s160_s16 = scalar_lea.hbm %s264_s0, 256 }
   0x2   :  { %s15_s13 = sshll.u32 %s208_s12, 4  ;;  %p161_p0 = scmp.ne.s32.totalorder %s264_s0, %s160_s16  ;;  %s16_s13 = int_to_ptr.vmem [resolvable:$true] %s15_s13 }
   0x3   :  { %p164_p1 = scmp.lt.u32.totalorder %s160_s16, %s264_s0 }
   0x5   :  { %p166_p2 = pnand %p164_p1, %p161_p0 }
   0x7   :  { %169 = shalt.err (!%p166_p2)
}
   0x8   :  { %s170_s21 = scalar_lea.vmem %s16_s13, 256  ;;  %p175_p4 = scmp.lt.s32.totalorder %s16_s13, %s16_s13 }
   0x9   :  { %p171_p3 = scmp.ne.s32.totalorder %s16_s13, %s170_s21  ;;  %p176_p5 = scmp.lt.s32.totalorder %s170_s21, %s170_s21 }
   0xb   :  { %p177_p6 = por %p176_p5, %p175_p4 }
   0xd   :  { %p178_p7 = pnand %p177_p6, %p171_p3 }
   0xf   :  { %181 = shalt.err (!%p178_p7)
}
  0x10   :  { %s209_s22 = smov 128   ;;  %s210_s23 = smov 8  }
  0x11   :  { %21 = dma.hbm_to_vmem [thread:$0]  %s264_s0, 256, %s16_s13, [#allocation3], %s209_s22, %s209_s22, %s210_s23  }
  0x12   :  { %204 = dma.done.wait [#allocation3], 256  }
  0x13   :  { %205 = vsyncadd [#allocation3], 4294967040  ;;  %vm38_vm0 = vcmask 1043456   ;;  %v30_v0 = vld [vmem:[#allocation2] sm:$0xff]  ;;  %v31_v1 = vld [vmem:[#allocation2 + $0x8] sm:$0xff]  ;;  %vm82_vm1 = vcmask 1041408   ;;  %v65_v13 = vlaneseq }
  0x14   :  { %v34_v2 = vcombine.high %v30_v0, %v30_v0  ;;  %v39_v3 = vsel %vm38_vm0, %v30_v0, 0.0  ;;  %v35_v4 = vcombine.high %v31_v1, %v31_v1  ;;  %v44_v6 = vsel %vm38_vm0, %v31_v1, 0.0  ;;  %v53_v10 = vld [vmem:[%s265_s1] sm:$0x3]  ;;  %s213_s28 = smov [#allocation5]  }
  0x15   :  { %v211_v11 = vmov 0.0   ;;  %v84_v12 = vsel %vm82_vm1, %v53_v10, 0  ;;  %vm212_vm2 = vmmov 0   ;;  %v66_v16 = vand.u32 127, %v65_v13  ;;  %v142_v29 = vld [vmem:[%s266_s2] ss:$0 sm:$0xff] }
  0x16   :  { %v40_v5 = vsel %vm38_vm0, %v34_v2, 0.0  ;;  %v45_v7 = vsel %vm38_vm0, %v35_v4, 0.0  ;;  %146 = vmatprep.subr.bf16.mxu0 %v211_v11  ;;  %148 = vmatprep.mubr.msk.bf16.mxu0 %vm212_vm2, %v211_v11  ;;  %v68_v17 = vshrl.u32 %v65_v13, 7  ;;  %vm75_vm3 = vcmask 1041409   ;;  %s133_s29 = sshll.u32 %s213_s28, 4  ;;  %s134_s29 = int_to_ptr.vmem [resolvable:$true] %s133_s29 }
  0x17   :  { %v41_v8 = vadd.f32 %v40_v5, %v39_v3  ;;  %v46_v9 = vadd.f32 %v45_v7, %v44_v6  ;;  %147 = vmatpush3.bf16.msra.mxu0 %v84_v12  ;;  %vm78_vm4 = vcmask 31744   ;;  %s182_s30 = scalar_lea.vmem %s134_s29, 32  ;;  %p187_p9 = scmp.lt.s32.totalorder %s134_s29, %s134_s29 }
  0x18   :  { %v69_v21 = vsub.s32 %v66_v16, %v68_v17  ;;  %p183_p8 = scmp.ne.s32.totalorder %s134_s29, %s182_s30  ;;  %p188_p10 = scmp.lt.s32.totalorder %s182_s30, %s182_s30 }
  0x19   :  { %42 = vadd.xlane.f32.xlu0 %v41_v8 }
  0x1a   :  { %p189_p11 = por %p188_p10, %p187_p9 }
  0x1c   :  { %p190_p12 = pnand %p189_p11, %p183_p8 }
  0x1d   :  { %47 = vadd.xlane.f32.xlu0 %v46_v9 }
  0xa6   :  { %v43_v14 = vpop.xlane.xlu0 %42 }
  0xa7   :  { %v49_v15 = vmul.f32 0.00390625, %v43_v14 }
  0xa9   :  { %v51_v18 = vpack.c.bf16 %v49_v15, %v49_v15 }
  0xaa   :  { %v48_v19 = vpop.xlane.xlu0 %47 }
  0xab   :  { %v50_v20 = vmul.f32 0.00390625, %v48_v19  ;;  %v63_v22 = vunpack.c.l.b16 %v51_v18 }
  0xad   :  { %v52_v23 = vpack.c.bf16 %v50_v20, %v50_v20  ;;  %v70_v25 = vrot.slane %v63_v22, %v69_v21 }
  0xaf   :  { %v64_v24 = vunpack.c.l.b16 %v52_v23 }
  0xb1   :  { %v74_v26 = vrot.slane %v64_v24, %v69_v21 }
  0xb3   :  { %v76_v27 = vsel %vm75_vm3, %v74_v26, %v70_v25 }
  0xb4   :  { %v77_v28 = vpack.c.b16 %v76_v27, %v76_v27 }
  0xb6   :  { %149 = vmatmul.mubr.msk.bf16.vlgmr.msra.gmra.mrb[0].mxu0 %vm78_vm4, %v77_v28 }
 0x189   :  { %v120_v30 = vpop.f32.mrb[0].mxu0 }
 0x18a   :  { %v121_v31 = vadd.f32 %v142_v29, %v120_v30  ;;  %v150_v32 = vpop.f32.mrb[1].mxu0 }
 0x18b   :  { %v123_v33 = vpop.f32.mrb[2].mxu0 }
 0x18c   :  { %126 = vst [vmem:[#allocation5] sm:$0x3] %v121_v31  ;;  %v151_v34 = vpop.f32.mrb[3].mxu0 }
 0x18d   :  { %193 = shalt.err (!%p190_p12)
}
 0x18e   :  { %s194_s2 = scalar_lea.hbm %s267_s3, 32 }
 0x18f   :  { %p195_p13 = scmp.ne.s32.totalorder %s267_s3, %s194_s2  ;;  %p198_p0 = scmp.lt.u32.totalorder %s194_s2, %s267_s3 }
 0x191   :  { %p200_p1 = pnand %p198_p0, %p195_p13 }
 0x193   :  { %203 = shalt.err (!%p200_p1)
}
 0x194   :  { %136 = dma.vmem_to_hbm [thread:$0]  %s134_s29, 32, %s267_s3, [#allocation4]  }
 0x195   :  { %206 = dma.done.wait [#allocation4], 32  }
 0x196   :  { %207 = vsyncadd [#allocation4], 4294967264 }
 0x197   :  { %140 = vsyncpa [#allocation3], 1 }
 0x198   :  { %141 = vsyncpa [#allocation4], 1 }

</bundles_post_ra>
